<compile_context>
chip_gen: v6e
topology: v6e:2x2x1
jax: 0.10.0
libtpu: 0.0.40
codegen_flags: <defaults>
</compile_context>

<pallas_src>
import jax
import jax.numpy as jnp
import numpy as np
from jax.experimental import pallas as pl
from jax.experimental.pallas import tpu as pltpu

SENTENCE_LEN = 5


def _lstm_tagger_kernel(ids_ref, gate_tab_ref, whh_t_ref, wtag_t_ref,
                        btag_ref, out_ref, gx_ref, h_all):
    Bb, T, TAG = out_ref.shape
    H, H4 = whh_t_ref.shape

    # ---- fused embedding + input-projection gather ------------------------
    # gate_tab_ref[v] == emb[v] @ W_ih^T + (b_ih + b_hh), gate-permuted.
    # ids live in SMEM (scalar prefetch); each table row read is a dynamic
    # leading-dim VMEM load.  Rows are stored as (t * Bb + b) so every
    # recurrence step reads a contiguous (Bb, 4H) slab.
    base = pl.program_id(0) * (Bb * T)
    for b in range(Bb):
        for t in range(T):
            tok = ids_ref[base + b * T + t]
            row = gate_tab_ref[tok]                       # (1, 4H)
            r0 = t * Bb + b
            gx_ref[r0:r0 + 1, :] = row.reshape(1, H4)

    whh = whh_t_ref[...]                                  # (H, 4H) bf16

    # ---- recurrence: only h @ W_hh^T + gate math on the serial chain ------
    # Gate order is [i, f, o, g]: one sigmoid over 3H lanes, one tanh over H.
    h = jnp.zeros((Bb, H), jnp.float32)
    c = jnp.zeros((Bb, H), jnp.float32)
    for t in range(T):                                    # T small & static
        gates = gx_ref[t * Bb:(t + 1) * Bb, :] + jnp.dot(
            h.astype(jnp.bfloat16), whh,
            preferred_element_type=jnp.float32)           # (Bb, 4H) f32
        ifo = jax.nn.sigmoid(gates[:, :3 * H])
        g_g = jnp.tanh(gates[:, 3 * H:])
        i_g = ifo[:, :H]
        f_g = ifo[:, H:2 * H]
        o_g = ifo[:, 2 * H:]
        c = f_g * c + i_g * g_g
        h = o_g * jnp.tanh(c)
        h_all[:, t, :] = h

    # ---- hidden2tag + log_softmax: one bulk matmul + one bulk store -------
    h_flat = h_all[...].reshape(Bb * T, H).astype(jnp.bfloat16)
    tag = jnp.dot(h_flat, wtag_t_ref[...],
                  preferred_element_type=jnp.float32) + btag_ref[...]
    m = jnp.max(tag, axis=-1, keepdims=True)
    shifted = tag - m
    lse = jnp.log(jnp.sum(jnp.exp(shifted), axis=-1, keepdims=True))
    out_ref[...] = (shifted - lse).reshape(Bb, T, TAG)


def _round_up(x, m):
    return (x + m - 1) // m * m


def _vmem_bytes(shape, dtype):
    """Tile-padded VMEM footprint of one buffer."""
    itemsize = np.dtype(dtype).itemsize
    sublane = {4: 8, 2: 16, 1: 32}.get(itemsize, 8)
    if len(shape) < 2:
        n = 1
        for d in shape:
            n *= d
        return _round_up(max(n, 1), 128) * itemsize
    lead = 1
    for d in shape[:-2]:
        lead *= d
    return (lead * _round_up(shape[-2], sublane) * _round_up(shape[-1], 128)
            * itemsize)


def _choose_batch_block(batch):
    """Largest multiple-of-8 divisor of `batch` <= 128; when batch >= 16 also
    guarantee >= 2 grid steps so both v7x TensorCores get work."""
    if batch % 8 != 0:
        return batch
    cap = 128
    if batch >= 16:
        cap = min(cap, batch // 2)
    best = 8
    d = 8
    while d <= cap:
        if batch % d == 0:
            best = d
        d += 8
    return best


def _to_ifog(x):
    """Permute the last (4H) axis from PyTorch's [i, f, g, o] to [i, f, o, g]."""
    i, f, g, o = jnp.split(x, 4, axis=-1)
    return jnp.concatenate([i, f, o, g], axis=-1)


def lstm_tagger_forward(token_ids, params):
    """token_ids: (B, T) int32. Returns (B, T, TAG) log-probs."""
    emb = params["embedding"]                              # (V, E)
    V = emb.shape[0]
    H = params["w_hh"].shape[1]
    H4 = 4 * H
    TAG = params["w_tag"].shape[0]
    B, T = token_ids.shape

    # Fold embedding @ W_ih^T + (b_ih + b_hh) into one gather table and
    # permute gate columns to [i, f, o, g].  Shaped (V, 1, 4H) so the
    # in-kernel gather is a dynamic leading-dim row read.  XLA constant-folds
    # this per parameter set.
    gate_tab = _to_ifog(emb @ params["w_ih"].T
                        + (params["b_ih"] + params["b_hh"])[None, :])
    gate_tab = gate_tab.astype(jnp.float32).reshape(V, 1, H4)
    whh_t = _to_ifog(params["w_hh"].T).astype(jnp.bfloat16)     # (H, 4H)
    wtag_t = params["w_tag"].T.astype(jnp.bfloat16)             # (H, TAG)
    b_tag = params["b_tag"].reshape(1, -1).astype(jnp.float32)  # (1, TAG)
    ids_flat = token_ids.reshape(-1).astype(jnp.int32)          # (B*T,)

    b_block = _choose_batch_block(B)
    grid = (B // b_block,)

    # Explicit VMEM budget from actual (padded) buffers: x2 for the default
    # double buffering of pipelined operands, plus headroom.
    vmem_est = (
        2 * (_vmem_bytes((V, 1, H4), jnp.float32)
             + _vmem_bytes((H, H4), jnp.bfloat16)
             + _vmem_bytes((H, TAG), jnp.bfloat16)
             + _vmem_bytes((1, TAG), jnp.float32)
             + _vmem_bytes((b_block, T, TAG), jnp.float32))
        + _vmem_bytes((b_block * T, H4), jnp.float32)
        + _vmem_bytes((b_block, T, H), jnp.float32))
    vmem_limit = int(min(max(vmem_est + (8 << 20), 16 << 20), 64 << 20))

    grid_spec = pltpu.PrefetchScalarGridSpec(
        num_scalar_prefetch=1,                 # token ids -> SMEM
        grid=grid,
        in_specs=[
            pl.BlockSpec((V, 1, H4), lambda i, ids: (0, 0, 0)),  # gate table
            pl.BlockSpec((H, H4), lambda i, ids: (0, 0)),        # W_hh^T bf16
            pl.BlockSpec((H, TAG), lambda i, ids: (0, 0)),       # W_tag^T bf16
            pl.BlockSpec((1, TAG), lambda i, ids: (0, 0)),       # b_tag
        ],
        out_specs=pl.BlockSpec((b_block, T, TAG), lambda i, ids: (i, 0, 0)),
        scratch_shapes=[
            pltpu.VMEM((b_block * T, H4), jnp.float32),   # gathered gate rows
            pltpu.VMEM((b_block, T, H), jnp.float32),     # stacked h_t
        ],
    )

    return pl.pallas_call(
        _lstm_tagger_kernel,
        out_shape=jax.ShapeDtypeStruct((B, T, TAG), jnp.float32),
        grid_spec=grid_spec,
        compiler_params=pltpu.CompilerParams(
            dimension_semantics=("parallel",),
            vmem_limit_bytes=vmem_limit),
    )(ids_flat, gate_tab, whh_t, wtag_t, b_tag)


def _reference_forward(token_ids, params):
    """Pure-JAX f32 reference (mirrors PyTorch LSTMTagger forward)."""
    embeds = jnp.take(params["embedding"], token_ids, axis=0)   # (B, T, E)
    B, T, _ = embeds.shape
    H = params["w_hh"].shape[1]
    wih_t = params["w_ih"].T
    whh_t = params["w_hh"].T
    b_all = params["b_ih"] + params["b_hh"]
    h = jnp.zeros((B, H), jnp.float32)
    c = jnp.zeros((B, H), jnp.float32)
    hs = []
    for t in range(T):
        gates = embeds[:, t, :] @ wih_t + h @ whh_t + b_all
        i_g = jax.nn.sigmoid(gates[:, 0 * H:1 * H])
        f_g = jax.nn.sigmoid(gates[:, 1 * H:2 * H])
        g_g = jnp.tanh(gates[:, 2 * H:3 * H])
        o_g = jax.nn.sigmoid(gates[:, 3 * H:4 * H])
        c = f_g * c + i_g * g_g
        h = o_g * jnp.tanh(c)
        hs.append(h)
    h_all = jnp.stack(hs, axis=1)                               # (B, T, H)
    tag = h_all @ params["w_tag"].T + params["b_tag"]
    return jax.nn.log_softmax(tag, axis=-1)


def init_params(key, vocab_size, embedding_dim, hidden_dim, target_size):
    ks = jax.random.split(key, 7)
    scale = 0.1
    return {
        "embedding": scale * jax.random.normal(
            ks[0], (vocab_size, embedding_dim), jnp.float32),
        "w_ih": scale * jax.random.normal(
            ks[1], (4 * hidden_dim, embedding_dim), jnp.float32),
        "w_hh": scale * jax.random.normal(
            ks[2], (4 * hidden_dim, hidden_dim), jnp.float32),
        "b_ih": scale * jax.random.normal(
            ks[3], (4 * hidden_dim,), jnp.float32),
        "b_hh": scale * jax.random.normal(
            ks[4], (4 * hidden_dim,), jnp.float32),
        "w_tag": scale * jax.random.normal(
            ks[5], (target_size, hidden_dim), jnp.float32),
        "b_tag": scale * jax.random.normal(
            ks[6], (target_size,), jnp.float32),
    }


if __name__ == "__main__":
    BATCH = 2
    EMBEDDING_DIM = 8
    HIDDEN_DIM = 32
    VOCAB_SIZE = 20
    TARGET_SIZE = 6

    key = jax.random.PRNGKey(0)
    pkey, dkey = jax.random.split(key)
    params = init_params(pkey, VOCAB_SIZE, EMBEDDING_DIM, HIDDEN_DIM,
                         TARGET_SIZE)

    token_ids = jax.random.randint(
        dkey, (BATCH, SENTENCE_LEN), 0, VOCAB_SIZE, dtype=jnp.int32)

    tag_scores = lstm_tagger_forward(token_ids, params)
    jax.block_until_ready(tag_scores)

    assert tag_scores.shape == (BATCH, SENTENCE_LEN, TARGET_SIZE)
    # log_softmax rows should sum to ~1 in prob space (kernel softmax is f32)
    probs_sum = jnp.sum(jnp.exp(tag_scores), axis=-1)
    assert jnp.allclose(probs_sum, 1.0, atol=1e-4)
    # match the pure-JAX f32 reference; tolerance loosened because the kernel
    # runs its MXU matmuls with bf16 operands (f32 accumulation).
    ref = _reference_forward(token_ids, params)
    assert jnp.allclose(tag_scores, ref, atol=5e-2), (
        float(jnp.max(jnp.abs(tag_scores - ref))))

    print("KERNEL_OK")
</pallas_src>

<mosaic_0001>
module attributes {stable_mosaic.version = 11 : i64} {
  func.func @_lstm_tagger_kernel(%arg0: i32, %arg1: memref<10xi32, #tpu.memory_space<smem>>, %arg2: memref<20x1x128xf32, #tpu.memory_space<vmem>>, %arg3: memref<32x128xbf16, #tpu.memory_space<vmem>>, %arg4: memref<32x6xbf16, #tpu.memory_space<vmem>>, %arg5: memref<1x6xf32, #tpu.memory_space<vmem>>, %arg6: memref<2x5x6xf32, #tpu.memory_space<vmem>>, %arg7: memref<10x128xf32, #tpu.memory_space<vmem>>, %arg8: memref<2x5x32xf32, #tpu.memory_space<vmem>>) attributes {dimension_semantics = [#tpu.dimension_semantics<parallel>], iteration_bounds = array<i64: 1>, scalar_prefetch = 1 : i64, scratch_operands = 2 : i64, tpu.core_type = #tpu.core_type<tc>, window_params = [{pipeline_mode = #tpu.pipeline_mode<synchronous>, transform_indices = @transform_0, window_bounds = array<i64: 20, 1, 128>}, {pipeline_mode = #tpu.pipeline_mode<synchronous>, transform_indices = @transform_1, window_bounds = array<i64: 32, 128>}, {pipeline_mode = #tpu.pipeline_mode<synchronous>, transform_indices = @transform_2, window_bounds = array<i64: 32, 6>}, {pipeline_mode = #tpu.pipeline_mode<synchronous>, transform_indices = @transform_3, window_bounds = array<i64: 1, 6>}, {transform_indices = @transform_4, window_bounds = array<i64: 2, 5, 6>}]} {
    %c10_i32 = arith.constant 10 : i32
    %0 = arith.muli %arg0, %c10_i32 : i32
    %c0_i32 = arith.constant 0 : i32
    %1 = arith.addi %0, %c0_i32 : i32
    %c0_i32_0 = arith.constant 0 : i32
    %2 = arith.addi %1, %c0_i32_0 : i32
    %3 = arith.index_cast %2 : i32 to index
    %4 = memref.load %arg1[%3] : memref<10xi32, #tpu.memory_space<smem>>
    %5 = arith.index_cast %4 : i32 to index
    %c0 = arith.constant 0 : index
    %c0_1 = arith.constant 0 : index
    %6 = vector.load %arg2[%5, %c0, %c0_1] : memref<20x1x128xf32, #tpu.memory_space<vmem>>, vector<1x1x128xf32>
    %7 = vector.shape_cast %6 : vector<1x1x128xf32> to vector<1x128xf32>
    %c0_2 = arith.constant 0 : index
    %c0_3 = arith.constant 0 : index
    %8 = vector.load %arg7[%c0_2, %c0_3] : memref<10x128xf32, #tpu.memory_space<vmem>>, vector<1x128xf32>
    tpu.vector_store %arg7[%c0_2, %c0_3], %7 {strides = array<i32>} : memref<10x128xf32, #tpu.memory_space<vmem>>, vector<1x128xf32>,
    %c0_i32_4 = arith.constant 0 : i32
    %9 = arith.addi %0, %c0_i32_4 : i32
    %c1_i32 = arith.constant 1 : i32
    %10 = arith.addi %9, %c1_i32 : i32
    %11 = arith.index_cast %10 : i32 to index
    %12 = memref.load %arg1[%11] : memref<10xi32, #tpu.memory_space<smem>>
    %13 = arith.index_cast %12 : i32 to index
    %c0_5 = arith.constant 0 : index
    %c0_6 = arith.constant 0 : index
    %14 = vector.load %arg2[%13, %c0_5, %c0_6] : memref<20x1x128xf32, #tpu.memory_space<vmem>>, vector<1x1x128xf32>
    %15 = vector.shape_cast %14 : vector<1x1x128xf32> to vector<1x128xf32>
    %c2 = arith.constant 2 : index
    %c0_7 = arith.constant 0 : index
    %16 = vector.load %arg7[%c2, %c0_7] : memref<10x128xf32, #tpu.memory_space<vmem>>, vector<1x128xf32>
    tpu.vector_store %arg7[%c2, %c0_7], %15 {strides = array<i32>} : memref<10x128xf32, #tpu.memory_space<vmem>>, vector<1x128xf32>,
    %c0_i32_8 = arith.constant 0 : i32
    %17 = arith.addi %0, %c0_i32_8 : i32
    %c2_i32 = arith.constant 2 : i32
    %18 = arith.addi %17, %c2_i32 : i32
    %19 = arith.index_cast %18 : i32 to index
    %20 = memref.load %arg1[%19] : memref<10xi32, #tpu.memory_space<smem>>
    %21 = arith.index_cast %20 : i32 to index
    %c0_9 = arith.constant 0 : index
    %c0_10 = arith.constant 0 : index
    %22 = vector.load %arg2[%21, %c0_9, %c0_10] : memref<20x1x128xf32, #tpu.memory_space<vmem>>, vector<1x1x128xf32>
    %23 = vector.shape_cast %22 : vector<1x1x128xf32> to vector<1x128xf32>
    %c4 = arith.constant 4 : index
    %c0_11 = arith.constant 0 : index
    %24 = vector.load %arg7[%c4, %c0_11] : memref<10x128xf32, #tpu.memory_space<vmem>>, vector<1x128xf32>
    tpu.vector_store %arg7[%c4, %c0_11], %23 {strides = array<i32>} : memref<10x128xf32, #tpu.memory_space<vmem>>, vector<1x128xf32>,
    %c0_i32_12 = arith.constant 0 : i32
    %25 = arith.addi %0, %c0_i32_12 : i32
    %c3_i32 = arith.constant 3 : i32
    %26 = arith.addi %25, %c3_i32 : i32
    %27 = arith.index_cast %26 : i32 to index
    %28 = memref.load %arg1[%27] : memref<10xi32, #tpu.memory_space<smem>>
    %29 = arith.index_cast %28 : i32 to index
    %c0_13 = arith.constant 0 : index
    %c0_14 = arith.constant 0 : index
    %30 = vector.load %arg2[%29, %c0_13, %c0_14] : memref<20x1x128xf32, #tpu.memory_space<vmem>>, vector<1x1x128xf32>
    %31 = vector.shape_cast %30 : vector<1x1x128xf32> to vector<1x128xf32>
    %c6 = arith.constant 6 : index
    %c0_15 = arith.constant 0 : index
    %32 = vector.load %arg7[%c6, %c0_15] : memref<10x128xf32, #tpu.memory_space<vmem>>, vector<1x128xf32>
    tpu.vector_store %arg7[%c6, %c0_15], %31 {strides = array<i32>} : memref<10x128xf32, #tpu.memory_space<vmem>>, vector<1x128xf32>,
    %c0_i32_16 = arith.constant 0 : i32
    %33 = arith.addi %0, %c0_i32_16 : i32
    %c4_i32 = arith.constant 4 : i32
    %34 = arith.addi %33, %c4_i32 : i32
    %35 = arith.index_cast %34 : i32 to index
    %36 = memref.load %arg1[%35] : memref<10xi32, #tpu.memory_space<smem>>
    %37 = arith.index_cast %36 : i32 to index
    %c0_17 = arith.constant 0 : index
    %c0_18 = arith.constant 0 : index
    %38 = vector.load %arg2[%37, %c0_17, %c0_18] : memref<20x1x128xf32, #tpu.memory_space<vmem>>, vector<1x1x128xf32>
    %39 = vector.shape_cast %38 : vector<1x1x128xf32> to vector<1x128xf32>
    %c8 = arith.constant 8 : index
    %c0_19 = arith.constant 0 : index
    %40 = vector.load %arg7[%c8, %c0_19] : memref<10x128xf32, #tpu.memory_space<vmem>>, vector<1x128xf32>
    tpu.vector_store %arg7[%c8, %c0_19], %39 {strides = array<i32>} : memref<10x128xf32, #tpu.memory_space<vmem>>, vector<1x128xf32>,
    %c5_i32 = arith.constant 5 : i32
    %41 = arith.addi %0, %c5_i32 : i32
    %c0_i32_20 = arith.constant 0 : i32
    %42 = arith.addi %41, %c0_i32_20 : i32
    %43 = arith.index_cast %42 : i32 to index
    %44 = memref.load %arg1[%43] : memref<10xi32, #tpu.memory_space<smem>>
    %45 = arith.index_cast %44 : i32 to index
    %c0_21 = arith.constant 0 : index
    %c0_22 = arith.constant 0 : index
    %46 = vector.load %arg2[%45, %c0_21, %c0_22] : memref<20x1x128xf32, #tpu.memory_space<vmem>>, vector<1x1x128xf32>
    %47 = vector.shape_cast %46 : vector<1x1x128xf32> to vector<1x128xf32>
    %c1 = arith.constant 1 : index
    %c0_23 = arith.constant 0 : index
    %48 = vector.load %arg7[%c1, %c0_23] : memref<10x128xf32, #tpu.memory_space<vmem>>, vector<1x128xf32>
    tpu.vector_store %arg7[%c1, %c0_23], %47 {strides = array<i32>} : memref<10x128xf32, #tpu.memory_space<vmem>>, vector<1x128xf32>,
    %c5_i32_24 = arith.constant 5 : i32
    %49 = arith.addi %0, %c5_i32_24 : i32
    %c1_i32_25 = arith.constant 1 : i32
    %50 = arith.addi %49, %c1_i32_25 : i32
    %51 = arith.index_cast %50 : i32 to index
    %52 = memref.load %arg1[%51] : memref<10xi32, #tpu.memory_space<smem>>
    %53 = arith.index_cast %52 : i32 to index
    %c0_26 = arith.constant 0 : index
    %c0_27 = arith.constant 0 : index
    %54 = vector.load %arg2[%53, %c0_26, %c0_27] : memref<20x1x128xf32, #tpu.memory_space<vmem>>, vector<1x1x128xf32>
    %55 = vector.shape_cast %54 : vector<1x1x128xf32> to vector<1x128xf32>
    %c3 = arith.constant 3 : index
    %c0_28 = arith.constant 0 : index
    %56 = vector.load %arg7[%c3, %c0_28] : memref<10x128xf32, #tpu.memory_space<vmem>>, vector<1x128xf32>
    tpu.vector_store %arg7[%c3, %c0_28], %55 {strides = array<i32>} : memref<10x128xf32, #tpu.memory_space<vmem>>, vector<1x128xf32>,
    %c5_i32_29 = arith.constant 5 : i32
    %57 = arith.addi %0, %c5_i32_29 : i32
    %c2_i32_30 = arith.constant 2 : i32
    %58 = arith.addi %57, %c2_i32_30 : i32
    %59 = arith.index_cast %58 : i32 to index
    %60 = memref.load %arg1[%59] : memref<10xi32, #tpu.memory_space<smem>>
    %61 = arith.index_cast %60 : i32 to index
    %c0_31 = arith.constant 0 : index
    %c0_32 = arith.constant 0 : index
    %62 = vector.load %arg2[%61, %c0_31, %c0_32] : memref<20x1x128xf32, #tpu.memory_space<vmem>>, vector<1x1x128xf32>
    %63 = vector.shape_cast %62 : vector<1x1x128xf32> to vector<1x128xf32>
    %c5 = arith.constant 5 : index
    %c0_33 = arith.constant 0 : index
    %64 = vector.load %arg7[%c5, %c0_33] : memref<10x128xf32, #tpu.memory_space<vmem>>, vector<1x128xf32>
    tpu.vector_store %arg7[%c5, %c0_33], %63 {strides = array<i32>} : memref<10x128xf32, #tpu.memory_space<vmem>>, vector<1x128xf32>,
    %c5_i32_34 = arith.constant 5 : i32
    %65 = arith.addi %0, %c5_i32_34 : i32
    %c3_i32_35 = arith.constant 3 : i32
    %66 = arith.addi %65, %c3_i32_35 : i32
    %67 = arith.index_cast %66 : i32 to index
    %68 = memref.load %arg1[%67] : memref<10xi32, #tpu.memory_space<smem>>
    %69 = arith.index_cast %68 : i32 to index
    %c0_36 = arith.constant 0 : index
    %c0_37 = arith.constant 0 : index
    %70 = vector.load %arg2[%69, %c0_36, %c0_37] : memref<20x1x128xf32, #tpu.memory_space<vmem>>, vector<1x1x128xf32>
    %71 = vector.shape_cast %70 : vector<1x1x128xf32> to vector<1x128xf32>
    %c7 = arith.constant 7 : index
    %c0_38 = arith.constant 0 : index
    %72 = vector.load %arg7[%c7, %c0_38] : memref<10x128xf32, #tpu.memory_space<vmem>>, vector<1x128xf32>
    tpu.vector_store %arg7[%c7, %c0_38], %71 {strides = array<i32>} : memref<10x128xf32, #tpu.memory_space<vmem>>, vector<1x128xf32>,
    %c5_i32_39 = arith.constant 5 : i32
    %73 = arith.addi %0, %c5_i32_39 : i32
    %c4_i32_40 = arith.constant 4 : i32
    %74 = arith.addi %73, %c4_i32_40 : i32
    %75 = arith.index_cast %74 : i32 to index
    %76 = memref.load %arg1[%75] : memref<10xi32, #tpu.memory_space<smem>>
    %77 = arith.index_cast %76 : i32 to index
    %c0_41 = arith.constant 0 : index
    %c0_42 = arith.constant 0 : index
    %78 = vector.load %arg2[%77, %c0_41, %c0_42] : memref<20x1x128xf32, #tpu.memory_space<vmem>>, vector<1x1x128xf32>
    %79 = vector.shape_cast %78 : vector<1x1x128xf32> to vector<1x128xf32>
    %c9 = arith.constant 9 : index
    %c0_43 = arith.constant 0 : index
    %80 = vector.load %arg7[%c9, %c0_43] : memref<10x128xf32, #tpu.memory_space<vmem>>, vector<1x128xf32>
    tpu.vector_store %arg7[%c9, %c0_43], %79 {strides = array<i32>} : memref<10x128xf32, #tpu.memory_space<vmem>>, vector<1x128xf32>,
    %c0_44 = arith.constant 0 : index
    %c0_45 = arith.constant 0 : index
    %81 = vector.load %arg3[%c0_44, %c0_45] : memref<32x128xbf16, #tpu.memory_space<vmem>>, vector<32x128xbf16>
    %cst = arith.constant 0.000000e+00 : f32
    %82 = vector.broadcast %cst : f32 to vector<2x32xf32>
    %cst_46 = arith.constant 0.000000e+00 : f32
    %83 = vector.broadcast %cst_46 : f32 to vector<2x32xf32>
    %c0_47 = arith.constant 0 : index
    %c0_48 = arith.constant 0 : index
    %84 = vector.load %arg7[%c0_47, %c0_48] : memref<10x128xf32, #tpu.memory_space<vmem>>, vector<2x128xf32>
    %85 = arith.truncf %82 : vector<2x32xf32> to vector<2x32xbf16>
    %cst_49 = arith.constant dense<0.000000e+00> : vector<2x128xf32>
    %86 = tpu.matmul %85, %81, %cst_49 {dimension_numbers = #tpu.dot_dimension_numbers<[1], [0], [0], [1], [0, 0, 1, 1], [], []>} : vector<2x32xbf16>, vector<32x128xbf16>, vector<2x128xf32> -> vector<2x128xf32>
    %87 = arith.addf %84, %86 : vector<2x128xf32>
    %88 = vector.extract_strided_slice %87 {offsets = [0, 0], sizes = [2, 96], strides = [1, 1]} : vector<2x128xf32> to vector<2x96xf32>
    %89 = arith.negf %88 : vector<2x96xf32>
    %90 = math.exp %89 : vector<2x96xf32>
    %cst_50 = arith.constant 1.000000e+00 : f32
    %91 = vector.broadcast %cst_50 : f32 to vector<2x96xf32>
    %92 = arith.addf %91, %90 : vector<2x96xf32>
    %93 = arith.divf %91, %92 : vector<2x96xf32>
    %94 = vector.extract_strided_slice %87 {offsets = [0, 96], sizes = [2, 32], strides = [1, 1]} : vector<2x128xf32> to vector<2x32xf32>
    %95 = math.tanh %94 : vector<2x32xf32>
    %96 = vector.extract_strided_slice %93 {offsets = [0, 0], sizes = [2, 32], strides = [1, 1]} : vector<2x96xf32> to vector<2x32xf32>
    %97 = vector.extract_strided_slice %93 {offsets = [0, 32], sizes = [2, 32], strides = [1, 1]} : vector<2x96xf32> to vector<2x32xf32>
    %98 = vector.extract_strided_slice %93 {offsets = [0, 64], sizes = [2, 32], strides = [1, 1]} : vector<2x96xf32> to vector<2x32xf32>
    %99 = arith.mulf %97, %83 : vector<2x32xf32>
    %100 = arith.mulf %96, %95 : vector<2x32xf32>
    %101 = arith.addf %99, %100 : vector<2x32xf32>
    %102 = math.tanh %101 : vector<2x32xf32>
    %103 = arith.mulf %98, %102 : vector<2x32xf32>
    %c0_51 = arith.constant 0 : index
    %c0_52 = arith.constant 0 : index
    %c0_53 = arith.constant 0 : index
    %104 = vector.load %arg8[%c0_51, %c0_52, %c0_53] : memref<2x5x32xf32, #tpu.memory_space<vmem>>, vector<2x1x32xf32>
    %105 = vector.shape_cast %104 : vector<2x1x32xf32> to vector<2x32xf32>
    %106 = vector.shape_cast %103 : vector<2x32xf32> to vector<2x1x32xf32>
    tpu.vector_store %arg8[%c0_51, %c0_52, %c0_53], %106 {strides = array<i32>} : memref<2x5x32xf32, #tpu.memory_space<vmem>>, vector<2x1x32xf32>,
    %c2_54 = arith.constant 2 : index
    %c0_55 = arith.constant 0 : index
    %107 = vector.load %arg7[%c2_54, %c0_55] : memref<10x128xf32, #tpu.memory_space<vmem>>, vector<2x128xf32>
    %108 = arith.truncf %103 : vector<2x32xf32> to vector<2x32xbf16>
    %cst_56 = arith.constant dense<0.000000e+00> : vector<2x128xf32>
    %109 = tpu.matmul %108, %81, %cst_56 {dimension_numbers = #tpu.dot_dimension_numbers<[1], [0], [0], [1], [0, 0, 1, 1], [], []>} : vector<2x32xbf16>, vector<32x128xbf16>, vector<2x128xf32> -> vector<2x128xf32>
    %110 = arith.addf %107, %109 : vector<2x128xf32>
    %111 = vector.extract_strided_slice %110 {offsets = [0, 0], sizes = [2, 96], strides = [1, 1]} : vector<2x128xf32> to vector<2x96xf32>
    %112 = arith.negf %111 : vector<2x96xf32>
    %113 = math.exp %112 : vector<2x96xf32>
    %cst_57 = arith.constant 1.000000e+00 : f32
    %114 = vector.broadcast %cst_57 : f32 to vector<2x96xf32>
    %115 = arith.addf %114, %113 : vector<2x96xf32>
    %116 = arith.divf %114, %115 : vector<2x96xf32>
    %117 = vector.extract_strided_slice %110 {offsets = [0, 96], sizes = [2, 32], strides = [1, 1]} : vector<2x128xf32> to vector<2x32xf32>
    %118 = math.tanh %117 : vector<2x32xf32>
    %119 = vector.extract_strided_slice %116 {offsets = [0, 0], sizes = [2, 32], strides = [1, 1]} : vector<2x96xf32> to vector<2x32xf32>
    %120 = vector.extract_strided_slice %116 {offsets = [0, 32], sizes = [2, 32], strides = [1, 1]} : vector<2x96xf32> to vector<2x32xf32>
    %121 = vector.extract_strided_slice %116 {offsets = [0, 64], sizes = [2, 32], strides = [1, 1]} : vector<2x96xf32> to vector<2x32xf32>
    %122 = arith.mulf %120, %101 : vector<2x32xf32>
    %123 = arith.mulf %119, %118 : vector<2x32xf32>
    %124 = arith.addf %122, %123 : vector<2x32xf32>
    %125 = math.tanh %124 : vector<2x32xf32>
    %126 = arith.mulf %121, %125 : vector<2x32xf32>
    %c0_58 = arith.constant 0 : index
    %c1_59 = arith.constant 1 : index
    %c0_60 = arith.constant 0 : index
    %127 = vector.load %arg8[%c0_58, %c1_59, %c0_60] : memref<2x5x32xf32, #tpu.memory_space<vmem>>, vector<2x1x32xf32>
    %128 = vector.shape_cast %127 : vector<2x1x32xf32> to vector<2x32xf32>
    %129 = vector.shape_cast %126 : vector<2x32xf32> to vector<2x1x32xf32>
    tpu.vector_store %arg8[%c0_58, %c1_59, %c0_60], %129 {strides = array<i32>} : memref<2x5x32xf32, #tpu.memory_space<vmem>>, vector<2x1x32xf32>,
    %c4_61 = arith.constant 4 : index
    %c0_62 = arith.constant 0 : index
    %130 = vector.load %arg7[%c4_61, %c0_62] : memref<10x128xf32, #tpu.memory_space<vmem>>, vector<2x128xf32>
    %131 = arith.truncf %126 : vector<2x32xf32> to vector<2x32xbf16>
    %cst_63 = arith.constant dense<0.000000e+00> : vector<2x128xf32>
    %132 = tpu.matmul %131, %81, %cst_63 {dimension_numbers = #tpu.dot_dimension_numbers<[1], [0], [0], [1], [0, 0, 1, 1], [], []>} : vector<2x32xbf16>, vector<32x128xbf16>, vector<2x128xf32> -> vector<2x128xf32>
    %133 = arith.addf %130, %132 : vector<2x128xf32>
    %134 = vector.extract_strided_slice %133 {offsets = [0, 0], sizes = [2, 96], strides = [1, 1]} : vector<2x128xf32> to vector<2x96xf32>
    %135 = arith.negf %134 : vector<2x96xf32>
    %136 = math.exp %135 : vector<2x96xf32>
    %cst_64 = arith.constant 1.000000e+00 : f32
    %137 = vector.broadcast %cst_64 : f32 to vector<2x96xf32>
    %138 = arith.addf %137, %136 : vector<2x96xf32>
    %139 = arith.divf %137, %138 : vector<2x96xf32>
    %140 = vector.extract_strided_slice %133 {offsets = [0, 96], sizes = [2, 32], strides = [1, 1]} : vector<2x128xf32> to vector<2x32xf32>
    %141 = math.tanh %140 : vector<2x32xf32>
    %142 = vector.extract_strided_slice %139 {offsets = [0, 0], sizes = [2, 32], strides = [1, 1]} : vector<2x96xf32> to vector<2x32xf32>
    %143 = vector.extract_strided_slice %139 {offsets = [0, 32], sizes = [2, 32], strides = [1, 1]} : vector<2x96xf32> to vector<2x32xf32>
    %144 = vector.extract_strided_slice %139 {offsets = [0, 64], sizes = [2, 32], strides = [1, 1]} : vector<2x96xf32> to vector<2x32xf32>
    %145 = arith.mulf %143, %124 : vector<2x32xf32>
    %146 = arith.mulf %142, %141 : vector<2x32xf32>
    %147 = arith.addf %145, %146 : vector<2x32xf32>
    %148 = math.tanh %147 : vector<2x32xf32>
    %149 = arith.mulf %144, %148 : vector<2x32xf32>
    %c0_65 = arith.constant 0 : index
    %c2_66 = arith.constant 2 : index
    %c0_67 = arith.constant 0 : index
    %150 = vector.load %arg8[%c0_65, %c2_66, %c0_67] : memref<2x5x32xf32, #tpu.memory_space<vmem>>, vector<2x1x32xf32>
    %151 = vector.shape_cast %150 : vector<2x1x32xf32> to vector<2x32xf32>
    %152 = vector.shape_cast %149 : vector<2x32xf32> to vector<2x1x32xf32>
    tpu.vector_store %arg8[%c0_65, %c2_66, %c0_67], %152 {strides = array<i32>} : memref<2x5x32xf32, #tpu.memory_space<vmem>>, vector<2x1x32xf32>,
    %c6_68 = arith.constant 6 : index
    %c0_69 = arith.constant 0 : index
    %153 = vector.load %arg7[%c6_68, %c0_69] : memref<10x128xf32, #tpu.memory_space<vmem>>, vector<2x128xf32>
    %154 = arith.truncf %149 : vector<2x32xf32> to vector<2x32xbf16>
    %cst_70 = arith.constant dense<0.000000e+00> : vector<2x128xf32>
    %155 = tpu.matmul %154, %81, %cst_70 {dimension_numbers = #tpu.dot_dimension_numbers<[1], [0], [0], [1], [0, 0, 1, 1], [], []>} : vector<2x32xbf16>, vector<32x128xbf16>, vector<2x128xf32> -> vector<2x128xf32>
    %156 = arith.addf %153, %155 : vector<2x128xf32>
    %157 = vector.extract_strided_slice %156 {offsets = [0, 0], sizes = [2, 96], strides = [1, 1]} : vector<2x128xf32> to vector<2x96xf32>
    %158 = arith.negf %157 : vector<2x96xf32>
    %159 = math.exp %158 : vector<2x96xf32>
    %cst_71 = arith.constant 1.000000e+00 : f32
    %160 = vector.broadcast %cst_71 : f32 to vector<2x96xf32>
    %161 = arith.addf %160, %159 : vector<2x96xf32>
    %162 = arith.divf %160, %161 : vector<2x96xf32>
    %163 = vector.extract_strided_slice %156 {offsets = [0, 96], sizes = [2, 32], strides = [1, 1]} : vector<2x128xf32> to vector<2x32xf32>
    %164 = math.tanh %163 : vector<2x32xf32>
    %165 = vector.extract_strided_slice %162 {offsets = [0, 0], sizes = [2, 32], strides = [1, 1]} : vector<2x96xf32> to vector<2x32xf32>
    %166 = vector.extract_strided_slice %162 {offsets = [0, 32], sizes = [2, 32], strides = [1, 1]} : vector<2x96xf32> to vector<2x32xf32>
    %167 = vector.extract_strided_slice %162 {offsets = [0, 64], sizes = [2, 32], strides = [1, 1]} : vector<2x96xf32> to vector<2x32xf32>
    %168 = arith.mulf %166, %147 : vector<2x32xf32>
    %169 = arith.mulf %165, %164 : vector<2x32xf32>
    %170 = arith.addf %168, %169 : vector<2x32xf32>
    %171 = math.tanh %170 : vector<2x32xf32>
    %172 = arith.mulf %167, %171 : vector<2x32xf32>
    %c0_72 = arith.constant 0 : index
    %c3_73 = arith.constant 3 : index
    %c0_74 = arith.constant 0 : index
    %173 = vector.load %arg8[%c0_72, %c3_73, %c0_74] : memref<2x5x32xf32, #tpu.memory_space<vmem>>, vector<2x1x32xf32>
    %174 = vector.shape_cast %173 : vector<2x1x32xf32> to vector<2x32xf32>
    %175 = vector.shape_cast %172 : vector<2x32xf32> to vector<2x1x32xf32>
    tpu.vector_store %arg8[%c0_72, %c3_73, %c0_74], %175 {strides = array<i32>} : memref<2x5x32xf32, #tpu.memory_space<vmem>>, vector<2x1x32xf32>,
    %c8_75 = arith.constant 8 : index
    %c0_76 = arith.constant 0 : index
    %176 = vector.load %arg7[%c8_75, %c0_76] : memref<10x128xf32, #tpu.memory_space<vmem>>, vector<2x128xf32>
    %177 = arith.truncf %172 : vector<2x32xf32> to vector<2x32xbf16>
    %cst_77 = arith.constant dense<0.000000e+00> : vector<2x128xf32>
    %178 = tpu.matmul %177, %81, %cst_77 {dimension_numbers = #tpu.dot_dimension_numbers<[1], [0], [0], [1], [0, 0, 1, 1], [], []>} : vector<2x32xbf16>, vector<32x128xbf16>, vector<2x128xf32> -> vector<2x128xf32>
    %179 = arith.addf %176, %178 : vector<2x128xf32>
    %180 = vector.extract_strided_slice %179 {offsets = [0, 0], sizes = [2, 96], strides = [1, 1]} : vector<2x128xf32> to vector<2x96xf32>
    %181 = arith.negf %180 : vector<2x96xf32>
    %182 = math.exp %181 : vector<2x96xf32>
    %cst_78 = arith.constant 1.000000e+00 : f32
    %183 = vector.broadcast %cst_78 : f32 to vector<2x96xf32>
    %184 = arith.addf %183, %182 : vector<2x96xf32>
    %185 = arith.divf %183, %184 : vector<2x96xf32>
    %186 = vector.extract_strided_slice %179 {offsets = [0, 96], sizes = [2, 32], strides = [1, 1]} : vector<2x128xf32> to vector<2x32xf32>
    %187 = math.tanh %186 : vector<2x32xf32>
    %188 = vector.extract_strided_slice %185 {offsets = [0, 0], sizes = [2, 32], strides = [1, 1]} : vector<2x96xf32> to vector<2x32xf32>
    %189 = vector.extract_strided_slice %185 {offsets = [0, 32], sizes = [2, 32], strides = [1, 1]} : vector<2x96xf32> to vector<2x32xf32>
    %190 = vector.extract_strided_slice %185 {offsets = [0, 64], sizes = [2, 32], strides = [1, 1]} : vector<2x96xf32> to vector<2x32xf32>
    %191 = arith.mulf %189, %170 : vector<2x32xf32>
    %192 = arith.mulf %188, %187 : vector<2x32xf32>
    %193 = arith.addf %191, %192 : vector<2x32xf32>
    %194 = math.tanh %193 : vector<2x32xf32>
    %195 = arith.mulf %190, %194 : vector<2x32xf32>
    %c0_79 = arith.constant 0 : index
    %c4_80 = arith.constant 4 : index
    %c0_81 = arith.constant 0 : index
    %196 = vector.load %arg8[%c0_79, %c4_80, %c0_81] : memref<2x5x32xf32, #tpu.memory_space<vmem>>, vector<2x1x32xf32>
    %197 = vector.shape_cast %196 : vector<2x1x32xf32> to vector<2x32xf32>
    %198 = vector.shape_cast %195 : vector<2x32xf32> to vector<2x1x32xf32>
    tpu.vector_store %arg8[%c0_79, %c4_80, %c0_81], %198 {strides = array<i32>} : memref<2x5x32xf32, #tpu.memory_space<vmem>>, vector<2x1x32xf32>,
    %c0_82 = arith.constant 0 : index
    %c0_83 = arith.constant 0 : index
    %c0_84 = arith.constant 0 : index
    %199 = vector.load %arg8[%c0_82, %c0_83, %c0_84] : memref<2x5x32xf32, #tpu.memory_space<vmem>>, vector<2x5x32xf32>
    %200 = vector.shape_cast %199 : vector<2x5x32xf32> to vector<10x32xf32>
    %201 = arith.truncf %200 : vector<10x32xf32> to vector<10x32xbf16>
    %c0_85 = arith.constant 0 : index
    %c0_86 = arith.constant 0 : index
    %202 = vector.load %arg4[%c0_85, %c0_86] : memref<32x6xbf16, #tpu.memory_space<vmem>>, vector<32x6xbf16>
    %cst_87 = arith.constant dense<0.000000e+00> : vector<10x6xf32>
    %203 = tpu.matmul %201, %202, %cst_87 {dimension_numbers = #tpu.dot_dimension_numbers<[1], [0], [0], [1], [0, 0, 1, 1], [], []>} : vector<10x32xbf16>, vector<32x6xbf16>, vector<10x6xf32> -> vector<10x6xf32>
    %c0_88 = arith.constant 0 : index
    %c0_89 = arith.constant 0 : index
    %204 = vector.load %arg5[%c0_88, %c0_89] : memref<1x6xf32, #tpu.memory_space<vmem>>, vector<1x6xf32>
    %205 = vector.broadcast %204 : vector<1x6xf32> to vector<10x6xf32>
    %206 = arith.addf %203, %205 : vector<10x6xf32>
    %cst_90 = arith.constant dense<0xFF800000> : vector<10xf32>
    %207 = vector.multi_reduction <maximumf>, %206, %cst_90 [1] : vector<10x6xf32> to vector<10xf32>
    %208 = vector.shape_cast %207 : vector<10xf32> to vector<10x1xf32>
    %209 = vector.broadcast %208 : vector<10x1xf32> to vector<10x6xf32>
    %210 = arith.subf %206, %209 : vector<10x6xf32>
    %211 = math.exp %210 : vector<10x6xf32>
    %cst_91 = arith.constant dense<0.000000e+00> : vector<10xf32>
    %212 = vector.multi_reduction <add>, %211, %cst_91 [1] : vector<10x6xf32> to vector<10xf32>
    %213 = vector.shape_cast %212 : vector<10xf32> to vector<10x1xf32>
    %214 = math.log %213 : vector<10x1xf32>
    %215 = vector.broadcast %214 : vector<10x1xf32> to vector<10x6xf32>
    %216 = arith.subf %210, %215 : vector<10x6xf32>
    %217 = vector.shape_cast %216 : vector<10x6xf32> to vector<2x5x6xf32>
    %c0_92 = arith.constant 0 : index
    %c0_93 = arith.constant 0 : index
    %c0_94 = arith.constant 0 : index
    %218 = vector.load %arg6[%c0_92, %c0_93, %c0_94] : memref<2x5x6xf32, #tpu.memory_space<vmem>>, vector<2x5x6xf32>
    tpu.vector_store %arg6[%c0_92, %c0_93, %c0_94], %217 {strides = array<i32>} : memref<2x5x6xf32, #tpu.memory_space<vmem>>, vector<2x5x6xf32>,
    return
  }
  func.func @transform_0(%arg0: i32, %arg1: memref<10xi32, #tpu.memory_space<smem>>) -> (i32, i32, i32) {
    %c0_i32 = arith.constant 0 : i32
    %c0_i32_0 = arith.constant 0 : i32
    %c0_i32_1 = arith.constant 0 : i32
    %c0_i32_2 = arith.constant 0 : i32
    return %c0_i32, %c0_i32_0, %c0_i32_1 : i32, i32, i32
  }
  func.func @transform_1(%arg0: i32, %arg1: memref<10xi32, #tpu.memory_space<smem>>) -> (i32, i32) {
    %c0_i32 = arith.constant 0 : i32
    %c0_i32_0 = arith.constant 0 : i32
    %c0_i32_1 = arith.constant 0 : i32
    return %c0_i32, %c0_i32_0 : i32, i32
  }
  func.func @transform_2(%arg0: i32, %arg1: memref<10xi32, #tpu.memory_space<smem>>) -> (i32, i32) {
    %c0_i32 = arith.constant 0 : i32
    %c0_i32_0 = arith.constant 0 : i32
    %c0_i32_1 = arith.constant 0 : i32
    return %c0_i32, %c0_i32_0 : i32, i32
  }
  func.func @transform_3(%arg0: i32, %arg1: memref<10xi32, #tpu.memory_space<smem>>) -> (i32, i32) {
    %c0_i32 = arith.constant 0 : i32
    %c0_i32_0 = arith.constant 0 : i32
    %c0_i32_1 = arith.constant 0 : i32
    return %c0_i32, %c0_i32_0 : i32, i32
  }
  func.func @transform_4(%arg0: i32, %arg1: memref<10xi32, #tpu.memory_space<smem>>) -> (i32, i32, i32) {
    %c0_i32 = arith.constant 0 : i32
    %c0_i32_0 = arith.constant 0 : i32
    %c0_i32_1 = arith.constant 0 : i32
    return %arg0, %c0_i32, %c0_i32_0 : i32, i32, i32
  }
}

</mosaic_0001>

<bundles_post_ra>
// kernel: tpu_custom_call.1
= control target key start
LH: loop header
LB: loop body
LE: loop exit
PB: predicated region body
PF: predicated region fallthrough
CT: control target
= control target key end

     0   :  { %s1526_s0 = inlined_call_operand.vmem [shape: s32[10], index: 0, kind: input, shape index: {}]   ;;  %s1527_s1 = inlined_call_operand.vmem [shape: f32[20,1,128], index: 1, kind: input, shape index: {}]   ;;  %s1528_s2 = inlined_call_operand.hbm [shape: bf16[32,128], index: 2, kind: input, shape index: {}]   ;;  %s1529_s3 = inlined_call_operand.vmem [shape: bf16[32,6], index: 3, kind: input, shape index: {}]   ;;  %s1530_s4 = inlined_call_operand.vmem [shape: f32[1,6], index: 4, kind: input, shape index: {}]   ;;  %s1531_s5 = inlined_call_operand.vmem [shape: f32[2,5,6], index: 5, kind: output, shape index: {}]  }
   0x1   :  { %s10_s20 = sshll.u32 %s1526_s0, 4  ;;  %s11_s20 = int_to_ptr.vmem [resolvable:$true] %s10_s20 }
   0x2   :  { %s1231_s21 = scalar_lea.vmem %s11_s20, 16  ;;  %p1236_p1 = scmp.lt.s32.totalorder %s11_s20, %s11_s20 }
   0x3   :  { %p1232_p0 = scmp.ne.s32.totalorder %s11_s20, %s1231_s21  ;;  %p1237_p2 = scmp.lt.s32.totalorder %s1231_s21, %s1231_s21 }
   0x5   :  { %p1238_p3 = por %p1237_p2, %p1236_p1 }
   0x7   :  { %p1239_p4 = pnand %p1238_p3, %p1232_p0 }
   0x9   :  { %1242 = shalt.err (!%p1239_p4)  }
   0xa   :  { %s1267_s22 = smov [#allocation5]  }
   0xb   :  { %13 = dma.vmem_to_smem %s11_s20, 16, %s1267_s22, [#allocation4] }
   0xc   :  { %1263 = dma.done.wait [#allocation4], 16 }
   0xd   :  { %1264 = vsyncadd [#allocation4], 4294967280 }
   0xe   :  { %15 = sfence }
   0xf   :  { %16 = vsyncpa [#allocation7], 0  ;;  %s1268_s23 = smov [#allocation6]  }
  0x10   :  { %s24_s24 = sshll.u32 %s1268_s23, 4  ;;  %s25_s24 = int_to_ptr.vmem [resolvable:$true] %s24_s24 }
  0x11   :  { %s1251_s25 = scalar_lea.vmem %s25_s24, 256  ;;  %p1256_p6 = scmp.lt.s32.totalorder %s25_s24, %s25_s24 }
  0x12   :  { %p1252_p5 = scmp.ne.s32.totalorder %s25_s24, %s1251_s25  ;;  %p1257_p7 = scmp.lt.s32.totalorder %s1251_s25, %s1251_s25 }
  0x14   :  { %p1258_p8 = por %p1257_p7, %p1256_p6 }
  0x16   :  { %p1259_p9 = pnand %p1258_p8, %p1252_p5 }
  0x18   :  { %1262 = shalt.err (!%p1259_p9)
}
  0x19   :  { %s1269_s0 = smov 64   ;;  %s1270_s26 = smov 4  }
  0x1a   :  { %30 = dma.hbm_to_vmem [thread:$0]  %s1528_s2, 256, %s25_s24, [#allocation7], %s1269_s0, %s1269_s0, %s1270_s26  }
  0x1b   :  { %1265 = dma.done.wait [#allocation7], 256  }
  0x1c   :  { %1266 = vsyncadd [#allocation7], 4294967040  ;;  %v1271_v0 = vmov 0.0   ;;  %vm1272_vm0 = vmmov 0   ;;  %s40_s29 = sld [smem:[#allocation5]]  ;;  %v1320_v1 = vld [vmem:[#allocation6 + $0x8] sm:$0xff]  }
  0x1d   :  { %1120 = vmatprep.subr.bf16.mxu0 %v1271_v0  ;;  %1124 = vmatprep.mubr.msk.bf16.mxu0 %vm1272_vm0, %v1271_v0  ;;  %s1080_s30 = sld [smem:[#allocation5 + $0x5]]  ;;  %v1325_v2 = vld [vmem:[#allocation6] sm:$0xff]   ;;  %v1273_v5 = vmov 0   ;;  %s1274_s11 = smov 32   ;;  %vm106_vm1 = vcmask 261120   ;;  %vm212_vm2 = vcmask 253952  }
  0x1e   :  { %1128 = vmatprep.subr.bf16.mxu1 %v1271_v0  ;;  %1132 = vmatprep.mubr.msk.bf16.mxu1 %vm1272_vm0, %v1271_v0  ;;  %s1076_s12 = sld [smem:[#allocation5 + $0x1]]  ;;  %vm879_vm3 = vcmask 48128   ;;  %vm883_vm4 = vcmask 41984   ;;  %vm1058_vm5 = vcmask 45056  }
  0x1f   :  { %1121 = vmatpush3.bf16.msra.mxu0 %v1320_v1  ;;  %1129 = vmatpush3.bf16.msra.mxu1 %v1320_v1  ;;  %s1081_s13 = sld [smem:[#allocation5 + $0x6]] }
  0x20   :  { %1122 = vmatprep.subr.bf16.mxu0 %v1271_v0  ;;  %1130 = vmatprep.subr.bf16.mxu1 %v1271_v0  ;;  %s1077_s20 = sld [smem:[#allocation5 + $0x2]] }
  0x21   :  { %s1082_s21 = sld [smem:[#allocation5 + $0x7]] }
  0x22   :  { %s41_s7 = scalar_lea.vmem %s1527_s1, %s40_s29  ;;  %s1078_s28 = sld [smem:[#allocation5 + $0x3]] }
  0x23   :  { %s66_s10 = scalar_lea.vmem %s1527_s1, %s1080_s30  ;;  %v42_v3 = vld [vmem:[%s41_s7] sm:$0x1]  ;;  %1123 = vmatpush3.bf16.msra.mxu0 %v1325_v2  ;;  %1131 = vmatpush3.bf16.msra.mxu1 %v1325_v2  ;;  %s1083_s29 = sld [smem:[#allocation5 + $0x8]] }
  0x24   :  { %v67_v4 = vld [vmem:[%s66_s10] sm:$0x1]  ;;  %43 = vst [vmem:[#allocation2] sm:$0x1] %v42_v3  ;;  %1136 = vmatprep.subr.bf16.mxu0 %v1271_v0  ;;  %1144 = vmatprep.subr.bf16.mxu1 %v1271_v0  ;;  %s46_s16 = scalar_lea.vmem %s1527_s1, %s1076_s12  ;;  %s1079_s10 = sld [smem:[#allocation5 + $0x4]] }
  0x25   :  { %68 = vst [vmem:[#allocation2 + $0x1] sm:$0x1] %v67_v4  ;;  %v47_v23 = vld [vmem:[%s46_s16] sm:$0x1]  ;;  %s71_s19 = scalar_lea.vmem %s1527_s1, %s1081_s13  ;;  %s1084_s12 = sld [smem:[#allocation5 + $0x9]] }
  0x26   :  { %1125 = vmatmul.mubr.bf16.vlgmr.msra.gmra.mxu0 %v1273_v5  ;;  %48 = vst [vmem:[#allocation2 + $0x2] sm:$0x1] %v47_v23  ;;  %v72_v25 = vld [vmem:[%s71_s19] sm:$0x1]  ;;  %s51_s24 = scalar_lea.vmem %s1527_s1, %s1077_s20 }
  0x27   :  { %1137 = vmatpush3.bf16.msra.mxu0 %v1320_v1  ;;  %1140 = vmatprep.mubr.msk.bf16.mxu0 %vm1272_vm0, %v1271_v0  ;;  %73 = vst [vmem:[#allocation2 + $0x3] sm:$0x1] %v72_v25  ;;  %v52_v46 = vld [vmem:[%s51_s24] sm:$0x1]  ;;  %s76_s27 = scalar_lea.vmem %s1527_s1, %s1082_s21 }
  0x28   :  { %1138 = vmatprep.subr.bf16.mxu0 %v1271_v0  ;;  %53 = vst [vmem:[#allocation2 + $0x4] sm:$0x1] %v52_v46  ;;  %v77_v48 = vld [vmem:[%s76_s27] sm:$0x1]  ;;  %s56_s2 = scalar_lea.vmem %s1527_s1, %s1078_s28  ;;  %v1275_v46 = vmov 1966171168  }
  0x29   :  { %78 = vst [vmem:[#allocation2 + $0x5] sm:$0x1] %v77_v48  ;;  %s81_s9 = scalar_lea.vmem %s1527_s1, %s1083_s29  ;;  %v179_v48 = vlaneseq }
  0x2a   :  { %s61_s15 = scalar_lea.vmem %s1527_s1, %s1079_s10 }
  0x2b   :  { %1139 = vmatpush3.bf16.msra.mxu0 %v1325_v2  ;;  %s86_s18 = scalar_lea.vmem %s1527_s1, %s1084_s12 }
  0x2c   :  { %1152 = vmatprep.subr.bf16.mxu0 %v1271_v0  ;;  %v93_v6 = vld [vmem:[#allocation2] sm:$0x3] }
  0x2e   :  { %v215_v29 = vld [vmem:[#allocation2 + $0x2] sm:$0x3] }
  0x30   :  { %v327_v52 = vld [vmem:[#allocation2 + $0x4] sm:$0x3] }
  0xe6   :  { %v144_v7 = vpop.f32.mrf.mxu0 }
  0xe7   :  { %v150_v8 = vadd.f32 %v144_v7, %v93_v6  ;;  %v57_v6 = vld [vmem:[%s56_s2] sm:$0x1] }
  0xe8   :  { %v1126_v9 = vpop.f32.mrf.mxu0  ;;  %58 = vst [vmem:[#allocation2 + $0x6] sm:$0x1] %v57_v6 }
  0xe9   :  { %1183 = vtanh.f32 %v150_v8  ;;  %v1087_v13 = vmul.f32 -1.442695, %v150_v8  ;;  %v82_v8 = vld [vmem:[%s81_s9] sm:$0x1] }
  0xea   :  { %v147_v10 = vpop.f32.mrf.mxu0  ;;  %83 = vst [vmem:[#allocation2 + $0x7] sm:$0x1] %v82_v8 }
  0xeb   :  { %1185 = vpow2.f32 %v1087_v13 }
  0xec   :  { %v1127_v11 = vpop.f32.mrf.mxu0 }
  0xf6   :  { %v1184_v12 = vpop.eup %1183 }
  0xf7   :  { %160 = vrot.lane.b32.xlu0 %v1184_v12, %s1274_s11  ;;  %v439_v12 = vld [vmem:[#allocation2 + $0x6] sm:$0x3] }
  0xf8   :  { %v1186_v14 = vpop.eup %1185 }
  0xf9   :  { %v154_v15 = vadd.f32 1.0, %v1186_v14 }
  0xfb   :  { %1187 = vrcp.f32 %v154_v15 }
 0x108   :  { %v1188_v16 = vpop.eup %1187 }
 0x109   :  { %v158_v19 = vmul.f32 0.0, %v1188_v16 }
 0x169   :  { %v161_v17 = vpop.permute.xlu0 %160 }
 0x16a   :  { %v163_v18 = vmul.f32 %v1188_v16, %v161_v17 }
 0x16c   :  { %165 = vrot.lane.b32.xlu0 %v163_v18, %s1274_s11 }
 0x1de   :  { %v166_v20 = vpop.permute.xlu0 %165 }
 0x1df   :  { %v168_v21 = vadd.f32 %v166_v20, %v158_v19 }
 0x1e1   :  { %1189 = vtanh.f32 %v168_v21 }
 0x1ee   :  { %v1190_v22 = vpop.eup %1189 }
 0x1ef   :  { %171 = vrot.lane.b32.xlu1 %v1190_v22, %s1274_s11 }
 0x261   :  { %v172_v24 = vpop.permute.xlu1 %171 }
 0x262   :  { %v1353_v26 = vmul.f32 %v1188_v16, %v172_v24 }
 0x264   :  { %v216_v27 = vpack.c.bf16 %v1353_v26, %v1353_v26 }
 0x266   :  { %218 = vrot.lane.b32.xlu1 %v216_v27, %s1269_s0 }
 0x2d8   :  { %v219_v28 = vpop.permute.xlu1 %218 }
 0x2d9   :  { %1133 = vmatmul.mubr.msk.bf16.vlgmr.msra.gmra.mxu1 %vm106_vm1, %v219_v28 }
 0x2da   :  { %1145 = vmatpush3.bf16.msra.mxu1 %v1320_v1  ;;  %1148 = vmatprep.mubr.msk.bf16.mxu1 %vm1272_vm0, %v1271_v0 }
 0x2db   :  { %1146 = vmatprep.subr.bf16.mxu1 %v1271_v0 }
 0x2de   :  { %1147 = vmatpush3.bf16.msra.mxu1 %v1325_v2 }
 0x2df   :  { %1160 = vmatprep.subr.bf16.mxu1 %v1271_v0 }
 0x399   :  { %v257_v30 = vpop.f32.mrf.mxu1 }
 0x39a   :  { %v263_v31 = vadd.f32 %v257_v30, %v215_v29  ;;  %v62_v30 = vld [vmem:[%s61_s15] sm:$0x1] }
 0x39b   :  { %v1134_v32 = vpop.f32.mrf.mxu1  ;;  %63 = vst [vmem:[#allocation2 + $0x8] sm:$0x1] %v62_v30 }
 0x39c   :  { %1191 = vtanh.f32 %v263_v31  ;;  %v1089_v36 = vmul.f32 -1.442695, %v263_v31  ;;  %v87_v32 = vld [vmem:[%s86_s18] sm:$0x1] }
 0x39d   :  { %v260_v33 = vpop.f32.mrf.mxu1  ;;  %88 = vst [vmem:[#allocation2 + $0x9] sm:$0x1] %v87_v32 }
 0x39e   :  { %1193 = vpow2.f32 %v1089_v36 }
 0x39f   :  { %v1135_v34 = vpop.f32.mrf.mxu1 }
 0x3a4   :  { %v551_v36 = vld [vmem:[#allocation2 + $0x8] sm:$0x3] }
 0x3a9   :  { %v1192_v35 = vpop.eup %1191 }
 0x3aa   :  { %273 = vrot.lane.b32.xlu0 %v1192_v35, %s1274_s11 }
 0x3ab   :  { %v1194_v37 = vpop.eup %1193 }
 0x3ac   :  { %v267_v38 = vadd.f32 1.0, %v1194_v37 }
 0x3ae   :  { %1195 = vrcp.f32 %v267_v38 }
 0x3bb   :  { %v1196_v39 = vpop.eup %1195 }
 0x3bc   :  { %v271_v42 = vmul.f32 %v1196_v39, %v168_v21 }
 0x41c   :  { %v274_v40 = vpop.permute.xlu0 %273 }
 0x41d   :  { %v276_v41 = vmul.f32 %v1196_v39, %v274_v40 }
 0x41f   :  { %278 = vrot.lane.b32.xlu1 %v276_v41, %s1274_s11 }
 0x491   :  { %v279_v43 = vpop.permute.xlu1 %278 }
 0x492   :  { %v281_v44 = vadd.f32 %v279_v43, %v271_v42 }
 0x494   :  { %1197 = vtanh.f32 %v281_v44 }
 0x4a1   :  { %v1198_v45 = vpop.eup %1197 }
 0x4a2   :  { %284 = vrot.lane.b32.xlu0 %v1198_v45, %s1274_s11 }
 0x514   :  { %v285_v47 = vpop.permute.xlu0 %284 }
 0x515   :  { %v1374_v49 = vmul.f32 %v1196_v39, %v285_v47  ;;  %v177_v47 = vunpack.c.l.s4 %v1275_v46 }
 0x517   :  { %v328_v50 = vpack.c.bf16 %v1374_v49, %v1374_v49 }
 0x519   :  { %330 = vrot.lane.b32.xlu1 %v328_v50, %s1269_s0  ;;  %v178_v50 = vunpack.c.0.s8 %v177_v47 }
 0x58b   :  { %v331_v51 = vpop.permute.xlu1 %330 }
 0x58c   :  { %1141 = vmatmul.mubr.msk.bf16.vlgmr.msra.gmra.mxu0 %vm106_vm1, %v331_v51  ;;  %v180_v51 = vshrl.u32 %v179_v48, 7 }
 0x58d   :  { %1153 = vmatpush3.bf16.msra.mxu0 %v1320_v1  ;;  %1156 = vmatprep.mubr.msk.bf16.mxu0 %vm1272_vm0, %v1271_v0 }
 0x58e   :  { %1154 = vmatprep.subr.bf16.mxu0 %v1271_v0 }
 0x591   :  { %1155 = vmatpush3.bf16.msra.mxu0 %v1325_v2 }
 0x64c   :  { %v369_v53 = vpop.f32.mrf.mxu0 }
 0x64d   :  { %v375_v54 = vadd.f32 %v369_v53, %v327_v52  ;;  %v1414_v52 = vsub.s32 %v178_v50, %v180_v51 }
 0x64e   :  { %v1142_v55 = vpop.f32.mrf.mxu0 }
 0x64f   :  { %1199 = vtanh.f32 %v375_v54  ;;  %v1091_v59 = vmul.f32 -1.442695, %v375_v54  ;;  %v182_v53 = vrot.slane %v1353_v26, %v1414_v52 }
 0x650   :  { %v372_v56 = vpop.f32.mrf.mxu0 }
 0x651   :  { %1201 = vpow2.f32 %v1091_v59  ;;  %v295_v56 = vrot.slane %v1374_v49, %v1414_v52  ;;  %v1421_v59 = vsub.s32 0, %v180_v51 }
 0x652   :  { %v1143_v57 = vpop.f32.mrf.mxu0 }
 0x65c   :  { %v1200_v58 = vpop.eup %1199 }
 0x65d   :  { %385 = vrot.lane.b32.xlu0 %v1200_v58, %s1274_s11  ;;  %v190_v58 = vrot.slane %v182_v53, %v1414_v52 }
 0x65e   :  { %v1202_v60 = vpop.eup %1201 }
 0x65f   :  { %v379_v61 = vadd.f32 1.0, %v1202_v60 }
 0x661   :  { %1203 = vrcp.f32 %v379_v61  ;;  %v201_v61 = vrot.slane %v190_v58, %v1421_v59 }
 0x66e   :  { %v1204_v62 = vpop.eup %1203 }
 0x66f   :  { %v383_v2 = vmul.f32 %v1204_v62, %v281_v44 }
 0x6cf   :  { %v386_v63 = vpop.permute.xlu0 %385 }
 0x6d0   :  { %v388_v1 = vmul.f32 %v1204_v62, %v386_v63 }
 0x6d2   :  { %390 = vrot.lane.b32.xlu1 %v388_v1, %s1274_s11 }
 0x744   :  { %v391_v3 = vpop.permute.xlu1 %390 }
 0x745   :  { %v393_v4 = vadd.f32 %v391_v3, %v383_v2 }
 0x747   :  { %1205 = vtanh.f32 %v393_v4 }
 0x754   :  { %v1206_v5 = vpop.eup %1205 }
 0x755   :  { %396 = vrot.lane.b32.xlu0 %v1206_v5, %s1274_s11 }
 0x7c7   :  { %v397_v7 = vpop.permute.xlu0 %396 }
 0x7c8   :  { %v1394_v9 = vmul.f32 %v1204_v62, %v397_v7  ;;  %v303_v62 = vrot.slane %v295_v56, %v1414_v52 }
 0x7ca   :  { %v440_v10 = vpack.c.bf16 %v1394_v9, %v1394_v9  ;;  %v407_v60 = vrot.slane %v1394_v9, %v1414_v52  ;;  %v314_v49 = vrot.slane %v303_v62, %v1421_v59  ;;  %v183_v9 = vcombine.high %v182_v53, %v182_v53 }
 0x7cc   :  { %442 = vrot.lane.b32.xlu1 %v440_v10, %s1269_s0  ;;  %v415_v63 = vrot.slane %v407_v60, %v1414_v52 }
 0x7ce   :  { %v426_v1 = vrot.slane %v415_v63, %v1421_v59 }
 0x83e   :  { %v443_v11 = vpop.permute.xlu1 %442 }
 0x83f   :  { %1149 = vmatmul.mubr.msk.bf16.vlgmr.msra.gmra.mxu1 %vm106_vm1, %v443_v11  ;;  %v296_v11 = vcombine.high %v295_v56, %v295_v56 }
 0x840   :  { %1164 = vmatprep.mubr.msk.bf16.mxu1 %vm1272_vm0, %v1271_v0 }
 0x8ff   :  { %v481_v13 = vpop.f32.mrf.mxu1 }
 0x900   :  { %v487_v14 = vadd.f32 %v481_v13, %v439_v12  ;;  %v197_v12 = vrot.slane %v183_v9, %v1414_v52 }
 0x901   :  { %v1150_v15 = vpop.f32.mrf.mxu1 }
 0x902   :  { %1207 = vtanh.f32 %v487_v14  ;;  %v1093_v19 = vmul.f32 -1.442695, %v487_v14  ;;  %v408_v15 = vcombine.high %v407_v60, %v407_v60 }
 0x903   :  { %v484_v16 = vpop.f32.mrf.mxu1 }
 0x904   :  { %1209 = vpow2.f32 %v1093_v19  ;;  %v205_v16 = vrot.slane %v197_v12, %v1421_v59  ;;  %v1097_v12 = vld [vmem:[%s1530_s4] ss:$0 sm:$0xff] }
 0x905   :  { %v1151_v17 = vpop.f32.mrf.mxu1 }
 0x906   :  { %v310_v17 = vrot.slane %v296_v11, %v1414_v52 }
 0x908   :  { %v318_v19 = vrot.slane %v310_v17, %v1421_v59 }
 0x90f   :  { %v1208_v18 = vpop.eup %1207 }
 0x910   :  { %497 = vrot.lane.b32.xlu0 %v1208_v18, %s1274_s11 }
 0x911   :  { %v1210_v20 = vpop.eup %1209 }
 0x912   :  { %v491_v21 = vadd.f32 1.0, %v1210_v20  ;;  %v422_v20 = vrot.slane %v408_v15, %v1414_v52 }
 0x914   :  { %1211 = vrcp.f32 %v491_v21  ;;  %v430_v21 = vrot.slane %v422_v20, %v1421_v59 }
 0x921   :  { %v1212_v22 = vpop.eup %1211 }
 0x922   :  { %v495_v25 = vmul.f32 %v1212_v22, %v393_v4 }
 0x982   :  { %v498_v23 = vpop.permute.xlu0 %497 }
 0x983   :  { %v500_v24 = vmul.f32 %v1212_v22, %v498_v23 }
 0x985   :  { %502 = vrot.lane.b32.xlu1 %v500_v24, %s1274_s11  ;;  %v1179_v24 = vld [vmem:[%s1529_s3 + $0x8] sm:$0xff]  }
 0x986   :  { %1161 = vmatpush3.bf16.msra.mxu1 %v1179_v24 }
 0x987   :  { %1162 = vmatprep.subr.bf16.mxu1 %v1271_v0 }
 0x9f7   :  { %v503_v27 = vpop.permute.xlu1 %502 }
 0x9f8   :  { %v505_v28 = vadd.f32 %v503_v27, %v495_v25  ;;  %v1180_v27 = vld [vmem:[%s1529_s3] sm:$0xff]  }
 0x9f9   :  { %1163 = vmatpush3.bf16.msra.mxu1 %v1180_v27 }
 0x9fa   :  { %1213 = vtanh.f32 %v505_v28 }
 0xa07   :  { %v1214_v29 = vpop.eup %1213 }
 0xa08   :  { %508 = vrot.lane.b32.xlu0 %v1214_v29, %s1274_s11 }
 0xa7a   :  { %v509_v31 = vpop.permute.xlu0 %508 }
 0xa7b   :  { %v511_v33 = vmul.f32 %v1212_v22, %v509_v31 }
 0xa7d   :  { %v552_v34 = vpack.c.bf16 %v511_v33, %v511_v33  ;;  %v519_v26 = vrot.slane %v511_v33, %v1414_v52 }
 0xa7f   :  { %554 = vrot.lane.b32.xlu1 %v552_v34, %s1269_s0  ;;  %v527_v2 = vrot.slane %v519_v26, %v1414_v52  ;;  %v520_v18 = vcombine.high %v519_v26, %v519_v26 }
 0xa81   :  { %v538_v3 = vrot.slane %v527_v2, %v1421_v59  ;;  %v534_v22 = vrot.slane %v520_v18, %v1414_v52 }
 0xa83   :  { %v542_v23 = vrot.slane %v534_v22, %v1421_v59 }
 0xaf1   :  { %v555_v35 = vpop.permute.xlu1 %554 }
 0xaf2   :  { %1157 = vmatmul.mubr.msk.bf16.vlgmr.msra.gmra.mxu0 %vm106_vm1, %v555_v35 }
 0xbb2   :  { %v593_v37 = vpop.f32.mrf.mxu0 }
 0xbb3   :  { %v599_v38 = vadd.f32 %v593_v37, %v551_v36 }
 0xbb4   :  { %v1158_v39 = vpop.f32.mrf.mxu0 }
 0xbb5   :  { %1215 = vtanh.f32 %v599_v38  ;;  %v1095_v43 = vmul.f32 -1.442695, %v599_v38 }
 0xbb6   :  { %v596_v40 = vpop.f32.mrf.mxu0 }
 0xbb7   :  { %1217 = vpow2.f32 %v1095_v43 }
 0xbb8   :  { %v1159_v41 = vpop.f32.mrf.mxu0 }
 0xbc2   :  { %v1216_v42 = vpop.eup %1215 }
 0xbc3   :  { %609 = vrot.lane.b32.xlu0 %v1216_v42, %s1274_s11 }
 0xbc4   :  { %v1218_v44 = vpop.eup %1217 }
 0xbc5   :  { %v603_v45 = vadd.f32 1.0, %v1218_v44 }
 0xbc7   :  { %1219 = vrcp.f32 %v603_v45 }
 0xbd4   :  { %v1220_v54 = vpop.eup %1219 }
 0xbd5   :  { %v607_v4 = vmul.f32 %v1220_v54, %v505_v28 }
 0xc35   :  { %v610_v55 = vpop.permute.xlu0 %609 }
 0xc36   :  { %v612_v57 = vmul.f32 %v1220_v54, %v610_v55 }
 0xc38   :  { %614 = vrot.lane.b32.xlu1 %v612_v57, %s1274_s11 }
 0xc3c   :  { %206 = vrot.lane.b32.xlu1 %v201_v61, %s1269_s0 }
 0xc40   :  { %319 = vrot.lane.b32.xlu1 %v314_v49, %s1269_s0 }
 0xc44   :  { %431 = vrot.lane.b32.xlu1 %v426_v1, %s1269_s0 }
 0xc48   :  { %543 = vrot.lane.b32.xlu1 %v538_v3, %s1269_s0 }
 0xcaa   :  { %v615_v5 = vpop.permute.xlu1 %614 }
 0xcab   :  { %v617_v6 = vadd.f32 %v615_v5, %v607_v4 }
 0xcad   :  { %1221 = vtanh.f32 %v617_v6 }
 0xcae   :  { %v207_v7 = vpop.permute.xlu1 %206 }
 0xcaf   :  { %213 = vst.msk [vmem:[#allocation3] sm:$0x1] %vm212_vm2, %v207_v7 }
 0xcb2   :  { %v320_v8 = vpop.permute.xlu1 %319 }
 0xcb3   :  { %325 = vst.msk [vmem:[#allocation3 + $0x1] sm:$0x1] %vm212_vm2, %v320_v8 }
 0xcb6   :  { %v432_v10 = vpop.permute.xlu1 %431 }
 0xcb7   :  { %437 = vst.msk [vmem:[#allocation3 + $0x2] sm:$0x1] %vm212_vm2, %v432_v10 }
 0xcba   :  { %v1222_v13 = vpop.eup %1221  ;;  %v544_v14 = vpop.permute.xlu1 %543 }
 0xcbb   :  { %549 = vst.msk [vmem:[#allocation3 + $0x3] sm:$0x1] %vm212_vm2, %v544_v14  ;;  %620 = vrot.lane.b32.xlu0 %v1222_v13, %s1274_s11 }
 0xcbf   :  { %208 = vrot.lane.b32.xlu0 %v205_v16, %s1269_s0 }
 0xcc3   :  { %321 = vrot.lane.b32.xlu0 %v318_v19, %s1269_s0 }
 0xcc7   :  { %433 = vrot.lane.b32.xlu0 %v430_v21, %s1269_s0 }
 0xccb   :  { %545 = vrot.lane.b32.xlu0 %v542_v23, %s1269_s0 }
 0xd2d   :  { %v621_v25 = vpop.permute.xlu0 %620 }
 0xd2e   :  { %v623_v28 = vmul.f32 %v1220_v54, %v621_v25 }
 0xd30   :  { %v631_v29 = vrot.slane %v623_v28, %v1414_v52 }
 0xd31   :  { %v209_v30 = vpop.permute.xlu0 %208 }
 0xd32   :  { %v632_v31 = vcombine.high %v631_v29, %v631_v29  ;;  %214 = vst.msk [vmem:[#allocation3 + $0x8] sm:$0x1] %vm212_vm2, %v209_v30  ;;  %v639_v32 = vrot.slane %v631_v29, %v1414_v52 }
 0xd34   :  { %v650_v33 = vrot.slane %v639_v32, %v1421_v59  ;;  %v646_v34 = vrot.slane %v632_v31, %v1414_v52 }
 0xd35   :  { %v322_v35 = vpop.permute.xlu0 %321 }
 0xd36   :  { %326 = vst.msk [vmem:[#allocation3 + $0x9] sm:$0x1] %vm212_vm2, %v322_v35  ;;  %655 = vrot.lane.b32.xlu1 %v650_v33, %s1269_s0  ;;  %v654_v0 = vrot.slane %v646_v34, %v1421_v59 }
 0xd38   :  { %657 = vrot.lane.b32.xlu0 %v654_v0, %s1269_s0 }
 0xd39   :  { %v434_v36 = vpop.permute.xlu0 %433 }
 0xd3a   :  { %438 = vst.msk [vmem:[#allocation3 + $0xa] sm:$0x1] %vm212_vm2, %v434_v36 }
 0xd3d   :  { %v546_v37 = vpop.permute.xlu0 %545 }
 0xd3e   :  { %550 = vst.msk [vmem:[#allocation3 + $0xb] sm:$0x1] %vm212_vm2, %v546_v37 }
 0xda8   :  { %v656_v38 = vpop.permute.xlu1 %655 }
 0xda9   :  { %661 = vst.msk [vmem:[#allocation3 + $0x4] sm:$0x1] %vm212_vm2, %v656_v38 }
 0xdaa   :  { %v658_v39 = vpop.permute.xlu0 %657 }
 0xdab   :  { %662 = vst.msk [vmem:[#allocation3 + $0xc] sm:$0x1] %vm212_vm2, %v658_v39 }
 0xdb0   :  { %v663_v40 = vld [vmem:[#allocation3] sm:$0x1f] }
 0xdb1   :  { %v667_v41 = vcombine.high %v663_v40, %v663_v40  ;;  %v674_v42 = vrot.slane %v663_v40, %v1414_v52 }
 0xdb2   :  { %v664_v43 = vld [vmem:[#allocation3 + $0x8] sm:$0x1f] }
 0xdb3   :  { %v681_v44 = vrot.slane %v667_v41, %v1414_v52  ;;  %v682_v45 = vcombine.high %v674_v42, %v674_v42  ;;  %v706_v46 = vcombine.high %v664_v43, %v664_v43  ;;  %v713_v47 = vrot.slane %v664_v43, %v1414_v52 }
 0xdb4   :  { %v689_v48 = vrot.slane %v674_v42, %v1414_v52 }
 0xdb5   :  { %v696_v50 = vrot.slane %v681_v44, %v1414_v52  ;;  %v703_v51 = vrot.slane %v682_v45, %v1414_v52  ;;  %v720_v53 = vrot.slane %v706_v46, %v1414_v52  ;;  %v721_v54 = vcombine.high %v713_v47, %v713_v47 }
 0xdb6   :  { %v728_v55 = vrot.slane %v713_v47, %v1414_v52 }
 0xdb7   :  { %v745_v56 = vcombine.low %v689_v48, %v703_v51  ;;  %v1096_v57 = vcombine.high %v689_v48, %v703_v51  ;;  %v742_v58 = vrot.slane %v721_v54, %v1414_v52  ;;  %v735_v26 = vrot.slane %v720_v53, %v1414_v52 }
 0xdb8   :  { %v743_v59 = vcombine.high %v728_v55, %v728_v55  ;;  %v747_v60 = vcombine.low %v696_v50, %v728_v55 }
 0xdb9   :  { %v755_v61 = vrot.slane %v745_v56, %v1414_v52  ;;  %v762_v62 = vrot.slane %v1096_v57, %v1414_v52  ;;  %v744_v49 = vcombine.high %v742_v58, %v742_v58 }
 0xdba   :  { %v748_v63 = vcombine.low %v742_v58, %v743_v59  ;;  %v769_v1 = vrot.slane %v747_v60, %v1414_v52 }
 0xdbb   :  { %v777_v3 = vcombine.low %v755_v61, %v762_v62  ;;  %v794_v4 = vcombine.low %v744_v49, %v735_v26 }
 0xdbc   :  { %v776_v2 = vrot.slane %v748_v63, %v1414_v52 }
 0xdbd   :  { %v801_v6 = vrot.slane %v794_v4, %v1414_v52  ;;  %v785_v7 = vrot.slane %v777_v3, %v1414_v52 }
 0xdbe   :  { %v778_v5 = vcombine.low %v769_v1, %v776_v2 }
 0xdbf   :  { %v808_v10 = vrot.slane %v801_v6, %v1414_v52 }
 0xdc0   :  { %v792_v8 = vrot.slane %v778_v5, %v1414_v52 }
 0xdc2   :  { %v793_v9 = vcombine.low %v785_v7, %v792_v8 }
 0xdc4   :  { %v811_v11 = vpack.c.bf16 %v808_v10, %v793_v9 }
 0xdc6   :  { %1165 = vmatmul.mubr.msk.bf16.vlgmr.msra.gmra.mxu1 %vm106_vm1, %v811_v11 }
 0xe86   :  { %v872_v13 = vpop.f32.mrf.mxu1 }
 0xe87   :  { %v873_v14 = vadd.f32 %v1097_v12, %v872_v13 }
 0xe88   :  { %v1166_v15 = vpop.f32.mrf.mxu1 }
 0xe89   :  { %v880_v16 = vsel %vm879_vm3, %v873_v14, -inf }
 0xe8a   :  { %881 = vmax.xlane.f32.xlu1 %v880_v16  ;;  %v875_v17 = vpop.f32.mrf.mxu1 }
 0xe8b   :  { %v876_v18 = vadd.f32 %v1097_v12, %v875_v17 }
 0xe8c   :  { %v1167_v19 = vpop.f32.mrf.mxu1 }
 0xe8d   :  { %v884_v20 = vsel %vm883_vm4, %v876_v18, -inf }
 0xe8e   :  { %885 = vmax.xlane.f32.xlu0 %v884_v20 }
 0xf13   :  { %v882_v21 = vpop.xlane.xlu1 %881 }
 0xf14   :  { %v887_v22 = vsub.f32 %v873_v14, %v882_v21 }
 0xf16   :  { %v889_v23 = vmul.f32 1.442695, %v887_v22 }
 0xf17   :  { %v886_v24 = vpop.xlane.xlu0 %885 }
 0xf18   :  { %1223 = vpow2.f32 %v889_v23  ;;  %v888_v25 = vsub.f32 %v876_v18, %v886_v24 }
 0xf1a   :  { %v891_v27 = vmul.f32 1.442695, %v888_v25 }
 0xf1c   :  { %1225 = vpow2.f32 %v891_v27 }
 0xf25   :  { %v1224_v28 = vpop.eup %1223 }
 0xf26   :  { %v893_v29 = vsel %vm879_vm3, %v1224_v28, 0.0 }
 0xf27   :  { %894 = vadd.xlane.f32.xlu0 %v893_v29 }
 0xf29   :  { %v1226_v30 = vpop.eup %1225 }
 0xf2a   :  { %v896_v31 = vsel %vm883_vm4, %v1226_v30, 0.0 }
 0xf2b   :  { %897 = vadd.xlane.f32.xlu1 %v896_v31 }
 0xfb0   :  { %v895_v32 = vpop.xlane.xlu0 %894 }
 0xfb1   :  { %1227 = vlog2.f32 %v895_v32 }
 0xfb4   :  { %v898_v33 = vpop.xlane.xlu1 %897 }
 0xfb5   :  { %1229 = vlog2.f32 %v898_v33 }
 0xfbe   :  { %v1228_v34 = vpop.eup %1227 }
 0xfbf   :  { %v900_v35 = vmul.f32 0.6931472, %v1228_v34 }
 0xfc1   :  { %v903_v0 = vsub.f32 %v887_v22, %v900_v35 }
 0xfc2   :  { %v1230_v36 = vpop.eup %1229 }
 0xfc3   :  { %v907_v37 = vcombine.high %v903_v0, %v903_v0  ;;  %v914_v38 = vrot.slane %v903_v0, %v1414_v52  ;;  %v902_v39 = vmul.f32 0.6931472, %v1230_v36 }
 0xfc5   :  { %v921_v40 = vrot.slane %v907_v37, %v1414_v52  ;;  %v922_v41 = vcombine.high %v914_v38, %v914_v38  ;;  %v904_v42 = vsub.f32 %v888_v25, %v902_v39  ;;  %v930_v43 = vrot.slane %v914_v38, %v1414_v52 }
 0xfc7   :  { %v923_v44 = vcombine.high %v921_v40, %v921_v40  ;;  %v937_v45 = vrot.slane %v921_v40, %v1414_v52  ;;  %v944_v46 = vrot.slane %v922_v41, %v1414_v52  ;;  %v962_v47 = vrot.slane %v904_v42, %v1414_v52 }
 0xfc9   :  { %v951_v48 = vrot.slane %v923_v44, %v1414_v52  ;;  %v953_v50 = vcombine.high %v937_v45, %v937_v45  ;;  %v978_v51 = vcombine.low %v930_v43, %v944_v46  ;;  %v1101_v53 = vcombine.high %v930_v43, %v944_v46 }
 0xfca   :  { %v1000_v54 = vrot.slane %v937_v45, %v1414_v52  ;;  %v963_v55 = vcombine.high %v962_v47, %v962_v47  ;;  %v970_v56 = vrot.slane %v962_v47, %v1414_v52 }
 0xfcb   :  { %v986_v57 = vrot.slane %v978_v51, %v1414_v52  ;;  %v993_v58 = vrot.slane %v1101_v53, %v1414_v52  ;;  %v1017_v59 = vcombine.low %v951_v48, %v953_v50  ;;  %v955_v60 = vcombine.high %v951_v48, %v951_v48 }
 0xfcc   :  { %v977_v61 = vrot.slane %v963_v55, %v1414_v52  ;;  %v1015_v49 = vrot.slane %v1000_v54, %v1414_v52 }
 0xfcd   :  { %v1001_v62 = vcombine.low %v986_v57, %v993_v58  ;;  %v1018_v26 = vcombine.low %v955_v60, %v970_v56  ;;  %v1025_v1 = vrot.slane %v1017_v59, %v1414_v52 }
 0xfce   :  { %v1039_v3 = vrot.slane %v977_v61, %v1414_v52 }
 0xfcf   :  { %v1008_v63 = vrot.slane %v1001_v62, %v1414_v52  ;;  %v1032_v2 = vrot.slane %v1018_v26, %v1414_v52 }
 0xfd0   :  { %v1054_v7 = vrot.slane %v1039_v3, %v1414_v52 }
 0xfd1   :  { %v1016_v4 = vcombine.low %v1008_v63, %v1015_v49  ;;  %v1040_v5 = vcombine.low %v1025_v1, %v1032_v2 }
 0xfd3   :  { %1059 = vst.msk [vmem:[%s1531_s5] sm:$0x1f] %vm1058_vm5, %v1016_v4  ;;  %v1047_v6 = vrot.slane %v1040_v5, %v1414_v52 }
 0xfd5   :  { %v1055_v8 = vcombine.low %v1047_v6, %v1054_v7 }
 0xfd7   :  { %1060 = vst.msk [vmem:[%s1531_s5 + $0x8] sm:$0x1f] %vm1058_vm5, %v1055_v8 }
 0xfd8   :  { %1065 = vsyncpa [#allocation7], 1 }

</bundles_post_ra>
